<compile_context>
chip_gen: v5e
topology: v5e:2x2
jax: 0.10.0
libtpu: 0.0.40
codegen_flags: <defaults>
</compile_context>

<pallas_src>
import functools
import math

import jax
import jax.numpy as jnp
from jax.experimental import pallas as pl
from jax.experimental.pallas import tpu as pltpu


def _layernorm(h, eps=1e-5):
    # LayerNorm over the last dim, elementwise_affine=False (torch defaults:
    # eps=1e-5, biased variance).  Single data pass: both cross-lane reductions
    # (sum(h), sum(h*h)) can overlap on the XLU; statistics stay in float32.
    h = h.astype(jnp.float32)
    mean = jnp.mean(h, axis=-1, keepdims=True)
    mean_sq = jnp.mean(h * h, axis=-1, keepdims=True)
    var = mean_sq - mean * mean
    return (h - mean) * jax.lax.rsqrt(var + eps)


def critic_kernel(x_ref, w1_ref, b1_ref, w2_ref, b2_ref, w3_ref, b3_ref,
                  w4_ref, b4_ref, o_ref, *, compute_dtype, shared_input):
    cd = compute_dtype
    e_blk = w1_ref.shape[0]

    # ---- layer 1 ----
    if shared_input:
        # x is a single [tb, D_in] tile shared by every critic in this block.
        # Statically-unrolled per-member 2-D matmuls keep the broadcast implicit
        # (no e_blk copies of x materialized in VMEM/vregs).
        x = x_ref[...].astype(cd)
        h = jnp.stack(
            [jnp.dot(x, w1_ref[e], preferred_element_type=jnp.float32)
             for e in range(e_blk)],
            axis=0)                                               # [e_blk, tb, H]
        # TODO(synk): when H < 128, fold the ensemble into the N dim of a single
        # [tb, D_in] x [D_in, e_blk*H] matmul (needs a lane-splitting reshape).
    else:
        h = jnp.einsum("ebd,edh->ebh", x_ref[...].astype(cd), w1_ref[...],
                       preferred_element_type=jnp.float32)        # [e_blk, tb, H]
    h = jax.nn.relu(_layernorm(h + b1_ref[...]))

    # ---- layers 2 & 3: batched over the ensemble block on the MXU ----
    h = jnp.einsum("ebd,edh->ebh", h.astype(cd), w2_ref[...],
                   preferred_element_type=jnp.float32)
    h = jax.nn.relu(_layernorm(h + b2_ref[...]))

    h = jnp.einsum("ebd,edh->ebh", h.astype(cd), w3_ref[...],
                   preferred_element_type=jnp.float32)
    h = jax.nn.relu(_layernorm(h + b3_ref[...]))

    # ---- head: out_features == 1 -> VPU multiply + cross-lane reduction ----
    # (avoids the padded-N drain of an N=1 MXU matmul; w4 is lane-dense f32)
    w4 = w4_ref[...][:, 0, :].astype(jnp.float32)                 # [e_blk, H]
    q = jnp.sum(h * w4[:, None, :], axis=-1) + b4_ref[...][:, :, 0]  # [e_blk, tb]
    # TODO(synk): b4 could live in SMEM (or be folded post-kernel) to drop the
    # lane-padded (e_blk,1,1) VMEM block; negligible at these sizes.
    # TODO(synk): optional fp8 weight path for v7x (fp8-native MXU) not implemented.

    o_ref[...] = q[None].astype(o_ref.dtype)                      # (1, e_blk, tb)


def _vmem_capacity_bytes():
    try:
        info = pltpu.get_tpu_info()
        for attr in ("vmem_capacity_bytes", "vmem_size_bytes", "vmem_bytes"):
            v = getattr(info, attr, None)
            if v:
                return int(v)
    except Exception:
        pass
    return 64 * 1024 * 1024  # conservative fallback (v7x per-TensorCore VMEM)


def vectorized_critic_forward(state, action, params, *,
                              compute_dtype=jnp.bfloat16,
                              e_block=None, batch_block=None):
    """Pallas implementation of VectorizedCritic.forward.

    state: [B, state_dim] (or [E, B, state_dim]); action likewise.
    Returns q_values: [E, B] in float32.
    """
    (w1, b1), (w2, b2), (w3, b3), (w4, b4) = params
    E, H = w1.shape[0], w1.shape[-1]

    sa = jnp.concatenate([state, action], axis=-1)
    shared_input = (sa.ndim == 2)
    if not shared_input:
        assert sa.ndim == 3 and sa.shape[0] == E
    B, d_in = sa.shape[-2], sa.shape[-1]

    cd = jnp.dtype(compute_dtype)
    cd_bytes = cd.itemsize

    # ---- batch tiling: bounds per-step activation footprint, adds grid steps ----
    if batch_block is None:
        if B >= 256 and B % 128 == 0:
            tb = 256 if B % 256 == 0 else 128
        else:
            tb = B
    else:
        tb = batch_block
    assert B % tb == 0
    nb = B // tb

    # ---- VMEM-aware ensemble block selection + explicit scoped-VMEM limit ----
    vmem_cap = _vmem_capacity_bytes()
    budget = (vmem_cap * 3) // 4          # ~48 MiB on v7x, ~96 MiB on v5e/v6e

    def vmem_estimate(eb):
        w_bytes = eb * (d_in * H + 2 * H * H) * cd_bytes + eb * H * 4   # W1-3 + W4(f32)
        b_bytes = eb * (3 * H + 1) * 4
        x_bytes = (tb * d_in if shared_input else eb * tb * d_in) * cd_bytes
        out_bytes = eb * tb * 4
        act_bytes = 4 * eb * tb * H * 4                                  # live f32 activations
        # BlockSpec double-buffers every pipelined input/output block.
        return 2 * (w_bytes + b_bytes + x_bytes + out_bytes) + act_bytes

    if e_block is None:
        divisors = [d for d in range(1, E + 1) if E % d == 0]
        fitting = [d for d in divisors if vmem_estimate(d) <= budget] or [1]
        e_block = fitting[-1]
        # Prefer >= 4 total grid steps (>= 2 per TC on v7x / pipelined weight DMA),
        # falling back to >= 2; keep the ensemble block as large as still allows it.
        for min_steps in (4, 2):
            cands = [d for d in fitting if (E // d) * nb >= min_steps]
            if cands:
                e_block = max(cands)
                break
    assert E % e_block == 0
    G = E // e_block

    # ---- dtype plumbing (f32 accumulation; f32 head weight/bias) ----
    sa_c = sa.astype(cd)
    w1_c, w2_c, w3_c = (w.astype(cd) for w in (w1, w2, w3))
    w4_t = jnp.transpose(w4, (0, 2, 1)).astype(jnp.float32)       # (E, 1, H) lane-dense
    b1_f, b2_f, b3_f, b4_f = (b.astype(jnp.float32) for b in (b1, b2, b3, b4))

    if shared_input:
        # Single copy in HBM; grid-invariant along the ensemble axis.
        x_spec = pl.BlockSpec((tb, d_in), lambda e, b: (b, 0))
    else:
        x_spec = pl.BlockSpec((e_block, tb, d_in), lambda e, b: (e, b, 0))

    def wspec(shape):
        return pl.BlockSpec(shape, lambda e, b: (e, 0, 0))        # invariant along batch axis

    kernel = functools.partial(critic_kernel,
                               compute_dtype=cd, shared_input=shared_input)

    out = pl.pallas_call(
        kernel,
        out_shape=jax.ShapeDtypeStruct((G, e_block, B), jnp.float32),
        grid_spec=pltpu.PrefetchScalarGridSpec(
            num_scalar_prefetch=0,
            grid=(G, nb),
            in_specs=[
                x_spec,                          # x
                wspec((e_block, d_in, H)),       # W1
                wspec((e_block, 1, H)),          # b1
                wspec((e_block, H, H)),          # W2
                wspec((e_block, 1, H)),          # b2
                wspec((e_block, H, H)),          # W3
                wspec((e_block, 1, H)),          # b3
                wspec((e_block, 1, H)),          # W4 (lane-dense, f32)
                wspec((e_block, 1, 1)),          # b4
            ],
            out_specs=pl.BlockSpec((1, e_block, tb), lambda e, b: (e, 0, b)),
        ),
        compiler_params=pltpu.CompilerParams(
            dimension_semantics=("parallel", "parallel"),
            vmem_limit_bytes=int(budget)),
    )(sa_c, w1_c, b1_f, w2_c, b2_f, w3_c, b3_f, w4_t, b4_f)

    return out.reshape(E, B)


def init_params(key, state_dim, action_dim, hidden_dim, num_critics):
    """Deterministic synthetic init mirroring VectorizedCritic.__init__ semantics:
    kaiming_uniform(a=sqrt(5)) weights (bound = 1/sqrt(fan_in)),
    biases of first 3 layers = 0.1, last layer weight & bias ~ U(-0.003, 0.003)."""
    d_in = state_dim + action_dim
    E, H = num_critics, hidden_dim
    ks = jax.random.split(key, 8)

    def kaiming_w(k, fan_in, fan_out):
        bound = 1.0 / math.sqrt(fan_in)
        return jax.random.uniform(k, (E, fan_in, fan_out), jnp.float32, -bound, bound)

    w1 = kaiming_w(ks[0], d_in, H)
    b1 = jnp.full((E, 1, H), 0.1, jnp.float32)
    w2 = kaiming_w(ks[1], H, H)
    b2 = jnp.full((E, 1, H), 0.1, jnp.float32)
    w3 = kaiming_w(ks[2], H, H)
    b3 = jnp.full((E, 1, H), 0.1, jnp.float32)
    w4 = jax.random.uniform(ks[3], (E, H, 1), jnp.float32, -0.003, 0.003)
    b4 = jax.random.uniform(ks[4], (E, 1, 1), jnp.float32, -0.003, 0.003)
    return ((w1, b1), (w2, b2), (w3, b3), (w4, b4))


def reference_forward(state, action, params):
    """Pure-JAX reference of the torch module (float32)."""
    (w1, b1), (w2, b2), (w3, b3), (w4, b4) = params
    E = w1.shape[0]
    sa = jnp.concatenate([state, action], axis=-1)
    if sa.ndim == 2:
        sa = jnp.broadcast_to(sa[None], (E,) + sa.shape)

    def ln(h, eps=1e-5):
        mean = jnp.mean(h, axis=-1, keepdims=True)
        var = jnp.mean((h - mean) ** 2, axis=-1, keepdims=True)
        return (h - mean) * jax.lax.rsqrt(var + eps)

    h = jax.nn.relu(ln(sa @ w1 + b1))
    h = jax.nn.relu(ln(h @ w2 + b2))
    h = jax.nn.relu(ln(h @ w3 + b3))
    q = h @ w4 + b4
    return q[..., 0]


if __name__ == "__main__":
    state_dim, action_dim, hidden_dim, num_critics = 12, 4, 32, 4
    batch = 8

    key = jax.random.PRNGKey(0)
    k_state, k_action, k_params, k_extra = jax.random.split(key, 4)
    state = jax.random.normal(k_state, (batch, state_dim), jnp.float32)
    action = jax.random.normal(k_action, (batch, action_dim), jnp.float32)
    params = init_params(k_params, state_dim, action_dim, hidden_dim, num_critics)

    q_ref = reference_forward(state, action, params)

    # 1) f32 compute path: near-exact match vs the JAX reference.
    q_f32 = jax.block_until_ready(
        vectorized_critic_forward(state, action, params, compute_dtype=jnp.float32))
    assert q_f32.shape == (num_critics, batch)
    assert jnp.allclose(q_f32, q_ref, atol=1e-3, rtol=1e-3), "f32 mismatch vs JAX reference"

    # 2) default bf16 compute path (f32 accumulation / f32 LayerNorm).
    q_bf16 = jax.block_until_ready(vectorized_critic_forward(state, action, params))
    assert q_bf16.shape == (num_critics, batch)
    assert bool(jnp.all(jnp.isfinite(q_bf16)))
    assert jnp.allclose(q_bf16, q_ref, atol=1e-1, rtol=1e-1), "bf16 mismatch vs JAX reference"

    # 3) per-member (3-D) state/action inputs — exercises the non-shared path.
    state3 = jax.random.normal(jax.random.fold_in(k_extra, 0),
                               (num_critics, batch, state_dim), jnp.float32)
    action3 = jax.random.normal(jax.random.fold_in(k_extra, 1),
                                (num_critics, batch, action_dim), jnp.float32)
    q3_ref = reference_forward(state3, action3, params)
    q3 = jax.block_until_ready(
        vectorized_critic_forward(state3, action3, params, compute_dtype=jnp.float32))
    assert q3.shape == (num_critics, batch)
    assert jnp.allclose(q3, q3_ref, atol=1e-3, rtol=1e-3), "3-D input mismatch"

    # 4) larger batch — exercises the batch-tiled (nb > 1) grid path.
    big_b = 512
    state_b = jax.random.normal(jax.random.fold_in(k_extra, 2), (big_b, state_dim), jnp.float32)
    action_b = jax.random.normal(jax.random.fold_in(k_extra, 3), (big_b, action_dim), jnp.float32)
    qb_ref = reference_forward(state_b, action_b, params)
    qb = jax.block_until_ready(vectorized_critic_forward(state_b, action_b, params))
    assert qb.shape == (num_critics, big_b)
    assert jnp.allclose(qb, qb_ref, atol=1e-1, rtol=1e-1), "batch-tiled mismatch"

    print("KERNEL_OK")
</pallas_src>

<mosaic_0001>
module attributes {stable_mosaic.version = 11 : i64} {
  func.func @critic_kernel(%arg0: i32, %arg1: i32, %arg2: memref<8x16xf32, #tpu.memory_space<vmem>>, %arg3: memref<1x16x32xf32, #tpu.memory_space<vmem>>, %arg4: memref<1x1x32xf32, #tpu.memory_space<vmem>>, %arg5: memref<1x32x32xf32, #tpu.memory_space<vmem>>, %arg6: memref<1x1x32xf32, #tpu.memory_space<vmem>>, %arg7: memref<1x32x32xf32, #tpu.memory_space<vmem>>, %arg8: memref<1x1x32xf32, #tpu.memory_space<vmem>>, %arg9: memref<1x1x32xf32, #tpu.memory_space<vmem>>, %arg10: memref<1x1x1xf32, #tpu.memory_space<vmem>>, %arg11: memref<1x1x8xf32, #tpu.memory_space<vmem>>) attributes {dimension_semantics = [#tpu.dimension_semantics<parallel>, #tpu.dimension_semantics<parallel>], iteration_bounds = array<i64: 4, 1>, scalar_prefetch = 0 : i64, scratch_operands = 0 : i64, tpu.core_type = #tpu.core_type<tc>, window_params = [{transform_indices = @transform_0, window_bounds = array<i64: 8, 16>}, {transform_indices = @transform_1, window_bounds = array<i64: 1, 16, 32>}, {transform_indices = @transform_2, window_bounds = array<i64: 1, 1, 32>}, {transform_indices = @transform_3, window_bounds = array<i64: 1, 32, 32>}, {transform_indices = @transform_4, window_bounds = array<i64: 1, 1, 32>}, {transform_indices = @transform_5, window_bounds = array<i64: 1, 32, 32>}, {transform_indices = @transform_6, window_bounds = array<i64: 1, 1, 32>}, {transform_indices = @transform_7, window_bounds = array<i64: 1, 1, 32>}, {transform_indices = @transform_8, window_bounds = array<i64: 1, 1, 1>}, {transform_indices = @transform_9, window_bounds = array<i64: 1, 1, 8>}]} {
    %c0 = arith.constant 0 : index
    %c0_0 = arith.constant 0 : index
    %0 = vector.load %arg2[%c0, %c0_0] : memref<8x16xf32, #tpu.memory_space<vmem>>, vector<8x16xf32>
    %c0_1 = arith.constant 0 : index
    %c0_2 = arith.constant 0 : index
    %c0_3 = arith.constant 0 : index
    %1 = vector.load %arg3[%c0_1, %c0_2, %c0_3] : memref<1x16x32xf32, #tpu.memory_space<vmem>>, vector<1x16x32xf32>
    %2 = vector.shape_cast %1 : vector<1x16x32xf32> to vector<16x32xf32>
    %cst = arith.constant dense<0.000000e+00> : vector<8x32xf32>
    %3 = tpu.matmul %0, %2, %cst {dimension_numbers = #tpu.dot_dimension_numbers<[1], [0], [0], [1], [0, 0, 1, 1], [], []>} : vector<8x16xf32>, vector<16x32xf32>, vector<8x32xf32> -> vector<8x32xf32>
    %4 = vector.shape_cast %3 : vector<8x32xf32> to vector<1x8x32xf32>
    %c0_4 = arith.constant 0 : index
    %c0_5 = arith.constant 0 : index
    %c0_6 = arith.constant 0 : index
    %5 = vector.load %arg4[%c0_4, %c0_5, %c0_6] : memref<1x1x32xf32, #tpu.memory_space<vmem>>, vector<1x1x32xf32>
    %6 = vector.broadcast %5 : vector<1x1x32xf32> to vector<1x8x32xf32>
    %7 = arith.addf %4, %6 : vector<1x8x32xf32>
    %cst_7 = arith.constant dense<0.000000e+00> : vector<1x8xf32>
    %8 = vector.multi_reduction <add>, %7, %cst_7 [2] : vector<1x8x32xf32> to vector<1x8xf32>
    %9 = vector.shape_cast %8 : vector<1x8xf32> to vector<1x8x1xf32>
    %cst_8 = arith.constant 3.200000e+01 : f32
    %10 = vector.broadcast %cst_8 : f32 to vector<1x8x1xf32>
    %11 = arith.divf %9, %10 : vector<1x8x1xf32>
    %12 = arith.mulf %7, %7 : vector<1x8x32xf32>
    %cst_9 = arith.constant dense<0.000000e+00> : vector<1x8xf32>
    %13 = vector.multi_reduction <add>, %12, %cst_9 [2] : vector<1x8x32xf32> to vector<1x8xf32>
    %14 = vector.shape_cast %13 : vector<1x8xf32> to vector<1x8x1xf32>
    %cst_10 = arith.constant 3.200000e+01 : f32
    %15 = vector.broadcast %cst_10 : f32 to vector<1x8x1xf32>
    %16 = arith.divf %14, %15 : vector<1x8x1xf32>
    %17 = arith.mulf %11, %11 : vector<1x8x1xf32>
    %18 = arith.subf %16, %17 : vector<1x8x1xf32>
    %19 = vector.broadcast %11 : vector<1x8x1xf32> to vector<1x8x32xf32>
    %20 = arith.subf %7, %19 : vector<1x8x32xf32>
    %cst_11 = arith.constant 9.99999974E-6 : f32
    %21 = vector.broadcast %cst_11 : f32 to vector<1x8x1xf32>
    %22 = arith.addf %18, %21 : vector<1x8x1xf32>
    %23 = math.rsqrt %22 : vector<1x8x1xf32>
    %24 = vector.broadcast %23 : vector<1x8x1xf32> to vector<1x8x32xf32>
    %25 = arith.mulf %20, %24 : vector<1x8x32xf32>
    %cst_12 = arith.constant 0.000000e+00 : f32
    %26 = vector.broadcast %cst_12 : f32 to vector<1x8x32xf32>
    %27 = arith.maximumf %25, %26 : vector<1x8x32xf32>
    %c0_13 = arith.constant 0 : index
    %c0_14 = arith.constant 0 : index
    %c0_15 = arith.constant 0 : index
    %28 = vector.load %arg5[%c0_13, %c0_14, %c0_15] : memref<1x32x32xf32, #tpu.memory_space<vmem>>, vector<1x32x32xf32>
    "tpu.trace_start"() <{level = 10 : i32, message = "ebd,edh->ebh"}> : () -> ()
    %cst_16 = arith.constant dense<0.000000e+00> : vector<1x8x32xf32>
    %29 = tpu.matmul %27, %28, %cst_16 {dimension_numbers = #tpu.dot_dimension_numbers<[2], [1], [1], [2], [0, 0, 0, 1, 1, 2], [0], [0]>} : vector<1x8x32xf32>, vector<1x32x32xf32>, vector<1x8x32xf32> -> vector<1x8x32xf32>
    "tpu.trace_stop"() : () -> ()
    %c0_17 = arith.constant 0 : index
    %c0_18 = arith.constant 0 : index
    %c0_19 = arith.constant 0 : index
    %30 = vector.load %arg6[%c0_17, %c0_18, %c0_19] : memref<1x1x32xf32, #tpu.memory_space<vmem>>, vector<1x1x32xf32>
    %31 = vector.broadcast %30 : vector<1x1x32xf32> to vector<1x8x32xf32>
    %32 = arith.addf %29, %31 : vector<1x8x32xf32>
    %cst_20 = arith.constant dense<0.000000e+00> : vector<1x8xf32>
    %33 = vector.multi_reduction <add>, %32, %cst_20 [2] : vector<1x8x32xf32> to vector<1x8xf32>
    %34 = vector.shape_cast %33 : vector<1x8xf32> to vector<1x8x1xf32>
    %cst_21 = arith.constant 3.200000e+01 : f32
    %35 = vector.broadcast %cst_21 : f32 to vector<1x8x1xf32>
    %36 = arith.divf %34, %35 : vector<1x8x1xf32>
    %37 = arith.mulf %32, %32 : vector<1x8x32xf32>
    %cst_22 = arith.constant dense<0.000000e+00> : vector<1x8xf32>
    %38 = vector.multi_reduction <add>, %37, %cst_22 [2] : vector<1x8x32xf32> to vector<1x8xf32>
    %39 = vector.shape_cast %38 : vector<1x8xf32> to vector<1x8x1xf32>
    %cst_23 = arith.constant 3.200000e+01 : f32
    %40 = vector.broadcast %cst_23 : f32 to vector<1x8x1xf32>
    %41 = arith.divf %39, %40 : vector<1x8x1xf32>
    %42 = arith.mulf %36, %36 : vector<1x8x1xf32>
    %43 = arith.subf %41, %42 : vector<1x8x1xf32>
    %44 = vector.broadcast %36 : vector<1x8x1xf32> to vector<1x8x32xf32>
    %45 = arith.subf %32, %44 : vector<1x8x32xf32>
    %cst_24 = arith.constant 9.99999974E-6 : f32
    %46 = vector.broadcast %cst_24 : f32 to vector<1x8x1xf32>
    %47 = arith.addf %43, %46 : vector<1x8x1xf32>
    %48 = math.rsqrt %47 : vector<1x8x1xf32>
    %49 = vector.broadcast %48 : vector<1x8x1xf32> to vector<1x8x32xf32>
    %50 = arith.mulf %45, %49 : vector<1x8x32xf32>
    %cst_25 = arith.constant 0.000000e+00 : f32
    %51 = vector.broadcast %cst_25 : f32 to vector<1x8x32xf32>
    %52 = arith.maximumf %50, %51 : vector<1x8x32xf32>
    %c0_26 = arith.constant 0 : index
    %c0_27 = arith.constant 0 : index
    %c0_28 = arith.constant 0 : index
    %53 = vector.load %arg7[%c0_26, %c0_27, %c0_28] : memref<1x32x32xf32, #tpu.memory_space<vmem>>, vector<1x32x32xf32>
    "tpu.trace_start"() <{level = 10 : i32, message = "ebd,edh->ebh"}> : () -> ()
    %cst_29 = arith.constant dense<0.000000e+00> : vector<1x8x32xf32>
    %54 = tpu.matmul %52, %53, %cst_29 {dimension_numbers = #tpu.dot_dimension_numbers<[2], [1], [1], [2], [0, 0, 0, 1, 1, 2], [0], [0]>} : vector<1x8x32xf32>, vector<1x32x32xf32>, vector<1x8x32xf32> -> vector<1x8x32xf32>
    "tpu.trace_stop"() : () -> ()
    %c0_30 = arith.constant 0 : index
    %c0_31 = arith.constant 0 : index
    %c0_32 = arith.constant 0 : index
    %55 = vector.load %arg8[%c0_30, %c0_31, %c0_32] : memref<1x1x32xf32, #tpu.memory_space<vmem>>, vector<1x1x32xf32>
    %56 = vector.broadcast %55 : vector<1x1x32xf32> to vector<1x8x32xf32>
    %57 = arith.addf %54, %56 : vector<1x8x32xf32>
    %cst_33 = arith.constant dense<0.000000e+00> : vector<1x8xf32>
    %58 = vector.multi_reduction <add>, %57, %cst_33 [2] : vector<1x8x32xf32> to vector<1x8xf32>
    %59 = vector.shape_cast %58 : vector<1x8xf32> to vector<1x8x1xf32>
    %cst_34 = arith.constant 3.200000e+01 : f32
    %60 = vector.broadcast %cst_34 : f32 to vector<1x8x1xf32>
    %61 = arith.divf %59, %60 : vector<1x8x1xf32>
    %62 = arith.mulf %57, %57 : vector<1x8x32xf32>
    %cst_35 = arith.constant dense<0.000000e+00> : vector<1x8xf32>
    %63 = vector.multi_reduction <add>, %62, %cst_35 [2] : vector<1x8x32xf32> to vector<1x8xf32>
    %64 = vector.shape_cast %63 : vector<1x8xf32> to vector<1x8x1xf32>
    %cst_36 = arith.constant 3.200000e+01 : f32
    %65 = vector.broadcast %cst_36 : f32 to vector<1x8x1xf32>
    %66 = arith.divf %64, %65 : vector<1x8x1xf32>
    %67 = arith.mulf %61, %61 : vector<1x8x1xf32>
    %68 = arith.subf %66, %67 : vector<1x8x1xf32>
    %69 = vector.broadcast %61 : vector<1x8x1xf32> to vector<1x8x32xf32>
    %70 = arith.subf %57, %69 : vector<1x8x32xf32>
    %cst_37 = arith.constant 9.99999974E-6 : f32
    %71 = vector.broadcast %cst_37 : f32 to vector<1x8x1xf32>
    %72 = arith.addf %68, %71 : vector<1x8x1xf32>
    %73 = math.rsqrt %72 : vector<1x8x1xf32>
    %74 = vector.broadcast %73 : vector<1x8x1xf32> to vector<1x8x32xf32>
    %75 = arith.mulf %70, %74 : vector<1x8x32xf32>
    %cst_38 = arith.constant 0.000000e+00 : f32
    %76 = vector.broadcast %cst_38 : f32 to vector<1x8x32xf32>
    %77 = arith.maximumf %75, %76 : vector<1x8x32xf32>
    %c0_39 = arith.constant 0 : index
    %c0_40 = arith.constant 0 : index
    %c0_41 = arith.constant 0 : index
    %78 = vector.load %arg9[%c0_39, %c0_40, %c0_41] : memref<1x1x32xf32, #tpu.memory_space<vmem>>, vector<1x1x32xf32>
    %79 = vector.shape_cast %78 : vector<1x1x32xf32> to vector<1x32xf32>
    %80 = vector.shape_cast %79 : vector<1x32xf32> to vector<1x1x32xf32>
    %81 = vector.broadcast %80 : vector<1x1x32xf32> to vector<1x8x32xf32>
    %82 = arith.mulf %77, %81 : vector<1x8x32xf32>
    %cst_42 = arith.constant dense<0.000000e+00> : vector<1x8xf32>
    %83 = vector.multi_reduction <add>, %82, %cst_42 [2] : vector<1x8x32xf32> to vector<1x8xf32>
    %c0_43 = arith.constant 0 : index
    %c0_44 = arith.constant 0 : index
    %c0_45 = arith.constant 0 : index
    %84 = vector.load %arg10[%c0_43, %c0_44, %c0_45] : memref<1x1x1xf32, #tpu.memory_space<vmem>>, vector<1x1x1xf32>
    %85 = vector.shape_cast %84 : vector<1x1x1xf32> to vector<1x1xf32>
    %86 = vector.broadcast %85 : vector<1x1xf32> to vector<1x8xf32>
    %87 = arith.addf %83, %86 : vector<1x8xf32>
    %88 = vector.shape_cast %87 : vector<1x8xf32> to vector<1x1x8xf32>
    %c0_46 = arith.constant 0 : index
    %c0_47 = arith.constant 0 : index
    %c0_48 = arith.constant 0 : index
    %89 = vector.load %arg11[%c0_46, %c0_47, %c0_48] : memref<1x1x8xf32, #tpu.memory_space<vmem>>, vector<1x1x8xf32>
    tpu.vector_store %arg11[%c0_46, %c0_47, %c0_48], %88 {strides = array<i32>} : memref<1x1x8xf32, #tpu.memory_space<vmem>>, vector<1x1x8xf32>,
    return
  }
  func.func @transform_0(%arg0: i32, %arg1: i32) -> (i32, i32) {
    %c0_i32 = arith.constant 0 : i32
    %c0_i32_0 = arith.constant 0 : i32
    return %arg1, %c0_i32 : i32, i32
  }
  func.func @transform_1(%arg0: i32, %arg1: i32) -> (i32, i32, i32) {
    %c0_i32 = arith.constant 0 : i32
    %c0_i32_0 = arith.constant 0 : i32
    %c0_i32_1 = arith.constant 0 : i32
    return %arg0, %c0_i32, %c0_i32_0 : i32, i32, i32
  }
  func.func @transform_2(%arg0: i32, %arg1: i32) -> (i32, i32, i32) {
    %c0_i32 = arith.constant 0 : i32
    %c0_i32_0 = arith.constant 0 : i32
    %c0_i32_1 = arith.constant 0 : i32
    return %arg0, %c0_i32, %c0_i32_0 : i32, i32, i32
  }
  func.func @transform_3(%arg0: i32, %arg1: i32) -> (i32, i32, i32) {
    %c0_i32 = arith.constant 0 : i32
    %c0_i32_0 = arith.constant 0 : i32
    %c0_i32_1 = arith.constant 0 : i32
    return %arg0, %c0_i32, %c0_i32_0 : i32, i32, i32
  }
  func.func @transform_4(%arg0: i32, %arg1: i32) -> (i32, i32, i32) {
    %c0_i32 = arith.constant 0 : i32
    %c0_i32_0 = arith.constant 0 : i32
    %c0_i32_1 = arith.constant 0 : i32
    return %arg0, %c0_i32, %c0_i32_0 : i32, i32, i32
  }
  func.func @transform_5(%arg0: i32, %arg1: i32) -> (i32, i32, i32) {
    %c0_i32 = arith.constant 0 : i32
    %c0_i32_0 = arith.constant 0 : i32
    %c0_i32_1 = arith.constant 0 : i32
    return %arg0, %c0_i32, %c0_i32_0 : i32, i32, i32
  }
  func.func @transform_6(%arg0: i32, %arg1: i32) -> (i32, i32, i32) {
    %c0_i32 = arith.constant 0 : i32
    %c0_i32_0 = arith.constant 0 : i32
    %c0_i32_1 = arith.constant 0 : i32
    return %arg0, %c0_i32, %c0_i32_0 : i32, i32, i32
  }
  func.func @transform_7(%arg0: i32, %arg1: i32) -> (i32, i32, i32) {
    %c0_i32 = arith.constant 0 : i32
    %c0_i32_0 = arith.constant 0 : i32
    %c0_i32_1 = arith.constant 0 : i32
    return %arg0, %c0_i32, %c0_i32_0 : i32, i32, i32
  }
  func.func @transform_8(%arg0: i32, %arg1: i32) -> (i32, i32, i32) {
    %c0_i32 = arith.constant 0 : i32
    %c0_i32_0 = arith.constant 0 : i32
    %c0_i32_1 = arith.constant 0 : i32
    return %arg0, %c0_i32, %c0_i32_0 : i32, i32, i32
  }
  func.func @transform_9(%arg0: i32, %arg1: i32) -> (i32, i32, i32) {
    %c0_i32 = arith.constant 0 : i32
    %c0_i32_0 = arith.constant 0 : i32
    return %arg0, %c0_i32, %arg1 : i32, i32, i32
  }
}

</mosaic_0001>

<bundles_post_ra>
// kernel: tpu_custom_call.1
= control target key start
LH: loop header
LB: loop body
LE: loop exit
PB: predicated region body
PF: predicated region fallthrough
CT: control target
= control target key end

     0   :  { %s1724_s0 = inlined_call_operand.hbm [shape: f32[8,16], index: 0, kind: input, shape index: {}]   ;;  %s1725_s1 = inlined_call_operand.hbm [shape: f32[4,16,32], index: 1, kind: input, shape index: {}]   ;;  %s1726_s2 = inlined_call_operand.vmem [shape: f32[4,1,32], index: 2, kind: input, shape index: {}]   ;;  %s1727_s3 = inlined_call_operand.hbm [shape: f32[4,32,32], index: 3, kind: input, shape index: {}]   ;;  %s1728_s4 = inlined_call_operand.hbm [shape: f32[4,1,32], index: 4, kind: input, shape index: {}]   ;;  %s1729_s5 = inlined_call_operand.hbm [shape: f32[4,32,32], index: 5, kind: input, shape index: {}]   ;;  %s1730_s6 = inlined_call_operand.vmem [shape: f32[4,1,32], index: 6, kind: input, shape index: {}]   ;;  %s1731_s7 = inlined_call_operand.hbm [shape: f32[4,1,32], index: 7, kind: input, shape index: {}]   ;;  %s1732_s8 = inlined_call_operand.vmem [shape: f32[4,1,1], index: 8, kind: input, shape index: {}]   ;;  %s1733_s9 = inlined_call_operand.hbm [shape: f32[4,1,8], index: 9, kind: output, shape index: {}]  }
   0x1   :  { %1747 = sst [smem:[#allocation26_spill]] %s1724_s0 }
   0x2   :  { %1748 = sst [smem:[#allocation27_spill]] %s1725_s1 }
   0x3   :  { %1749 = sst [smem:[#allocation28_spill]] %s1727_s3 }
   0x4   :  { %1750 = sst [smem:[#allocation29_spill]] %s1728_s4 }
   0x5   :  { %1751 = sst [smem:[#allocation30_spill]] %s1733_s9 }
   0x6   :  { %14 = vsyncpa [#allocation3], 0 }
   0x7   :  { %15 = vsyncpa [#allocation6], 0 }
   0x8   :  { %17 = vsyncpa [#allocation6 + $0x1], 0 }
   0x9   :  { %18 = vsyncpa [#allocation9], 0 }
   0xa   :  { %20 = vsyncpa [#allocation9 + $0x1], 0 }
   0xb   :  { %21 = vsyncpa [#allocation12], 0 }
   0xc   :  { %23 = vsyncpa [#allocation12 + $0x1], 0 }
   0xd   :  { %24 = vsyncpa [#allocation4], 0 }
   0xe   :  { %26 = vsyncpa [#allocation4 + $0x1], 0  ;;  %s1454_s30 = smov 0   ;;  %s1456_s10 = smov 0  }
   0xf   :  { %s1458_s11 = smov 0   ;;  %s1460_s12 = smov 0  }
  0x10   :  { %s1462_s13 = smov 0   ;;  %s1464_s14 = smov 0  }
  0x11 LB: > { %1752 = sst [smem:[#allocation19_spill]] %s1377_s30  ;;  %s44_s15 = sadd.s32 1, %s1393_s13  ;;  %s1397_s14 = sphi %s1464_s14, %s32_s14   ;;  %s1393_s13 = sphi %s1462_s13, %s1782_s13   ;;  %s1389_s12 = sphi %s1460_s12, %s1781_s12   ;;  %s1385_s11 = sphi %s1458_s11, %s1777_s11   ;;  %s1381_s10 = sphi %s1456_s10, %s1780_s10   ;;  %s1377_s30 = sphi %s1454_s30, %s1779_s30  }
  0x12   : > { %1753 = sst [smem:[#allocation20_spill]] %s1385_s11  ;;  %s77_s16 = sadd.s32 1, %s1385_s11 }
  0x13   : > { %1754 = sst [smem:[#allocation21_spill]] %s1397_s14  ;;  %p46_p0 = scmp.ge.s32.totalorder %s44_s15, 4 }
  0x14   : > { %p84_p1 = scmp.ne.s32.totalorder %s1385_s11, %s1381_s10  ;;  %p85_p2 = scmp.eq.s32.totalorder %s1397_s14, 0 }
  0x15   : > { %s1784_s15 = smov (%p46_p0, %s44_s15), 0  ;;  %p1054_p4 = scmp.lt.s32.totalorder %s1397_s14, 4 }
  0x16   : > { %1755 = sst [smem:[#allocation22_spill]] %s1784_s15  ;;  %p1494_p3 = por %p85_p2, %p84_p1 }
  0x17   : > { %s74_s18 = ssub.s32 %s1393_s13, %s1784_s15  ;;  %s338_s19 = sand.u32 1, %s1397_s14  }
  0x18   : > { %p75_p5 = scmp.eq.s32.totalorder %s74_s18, 0  ;;  %s1503_s20 = sand.u32 1, %s1385_s11  }
  0x19   : > { %s1010_s21 = sshll.u32 %s1393_s13, 4  ;;  %s991_s23 = sshll.u32 %s1503_s20, 4 }
  0x1a   : > { %s1507_s22 = scalar_select %p75_p5, %s1385_s11, %s77_s16  }
  0x1b   : > { %s1758_s1 = sld [smem:[#allocation27_spill]]  ;;  %s342_s28 = scalar_lea.vmem [#allocation5], %s991_s23 }
  0x1c   : > { %1757 = sst [smem:[#allocation23_spill]] %s1507_s22  ;;  %s350_s29 = sshll.u32 %s342_s28, 4  ;;  %s351_s29 = int_to_ptr.vmem [resolvable:$true] %s350_s29 }
  0x1d   : > { %p1517_p6 = pnand %p1054_p4, %p1494_p3  ;;  %s1521_s16 = scalar_lea.sflag [#allocation6], %s338_s19 }
  0x1e   : > { %s1737_s24 = smov 8   ;;  %s1760_s4 = sld [smem:[#allocation29_spill]] }
  0x1f   : > { %s391_s28 = scalar_lea.vmem [#allocation8], %s1503_s20  ;;  %s1534_s15 = scalar_lea.sflag [#allocation9], %s338_s19 }
  0x20   : > { %s1540_s22 = sadd.s32 4294967295, %s1397_s14   ;;  %p90_p7 = scmp.ne.s32.totalorder %s1381_s10, %s1377_s30 }
  0x21   : > { %s347_s26 = scalar_lea.hbm %s1758_s1, %s1010_s21  ;;  %s1735_s21 = smov 128  }
  0x22   : > { %s348_s27 = sshll.u32 %s347_s26, 4  ;;  %s398_s1 = sshll.u32 %s391_s28, 4  ;;  %s349_s27 = int_to_ptr.hbm [resolvable:$true] %s348_s27  ;;  %s399_s1 = int_to_ptr.vmem [resolvable:$true] %s398_s1 }
  0x23   : > { %1036 = dma.hbm_to_vmem [thread:$0]  (!%p1517_p6), %s349_s27, 256, %s351_s29, %s1521_s16, %s1735_s21, %s1735_s21, %s1737_s24  }
  0x24   : > { %s394_s25 = scalar_lea.hbm %s1760_s4, %s1393_s13  ;;  %s987_s27 = sadd.s32 4294967294, %s1397_s14  }
  0x25   : > { %s396_s26 = sshll.u32 %s394_s25, 4  ;;  %p91_p8 = scmp.eq.s32.totalorder %s1540_s22, 0  ;;  %s397_s26 = int_to_ptr.hbm [resolvable:$true] %s396_s26 }
  0x26   : > { %1042 = dma.hbm_to_vmem [thread:$0]  (!%p1517_p6), %s397_s26, 16, %s399_s1, %s1534_s15  }
  0x27   : > { %p298_p9 = scmp.eq.s32.totalorder %s1540_s22, 3  ;;  %p304_p10 = scmp.eq.s32.totalorder %s987_s27, 3 }
  0x28   : > { %p1549_p11 = por %p91_p8, %p90_p7  ;;  %p988_p12 = scmp.ge.s32.totalorder %s1397_s14, 1 }
  0x29   : > { %p1557_p13 = por %p298_p9, %p84_p1  ;;  %p1561_p0 = por %p304_p10, %p90_p7 }
  0x2a   : > { %p311_p2 = scmp.lt.s32.totalorder %s1397_s14, 5  ;;  %s1766_s0 = sld [smem:[#allocation26_spill]] }
  0x2b   : > { %s1762_s1 = scalar_select %p1557_p13, 1, 0 }
  0x2c   : > { %s1764_s29 = scalar_select %p1561_p0, 1, 0 }
  0x2d   : > { %1763 = sst [smem:[#allocation24_spill]] %s1762_s1  ;;  %p1569_p3 = pnand %p988_p12, %p311_p2 }
  0x2e   : > { %1765 = sst [smem:[#allocation25_spill]] %s1764_s29  ;;  %s1401_s28 = smov [#allocation2]  }
  0x2f   : > { %s327_s27 = sshll.u32 %s1401_s28, 4  ;;  %s994_s21 = sshll.u32 %s1503_s20, 5  ;;  %s328_s27 = int_to_ptr.vmem [resolvable:$true] %s327_s27 }
  0x30   : > { %s325_s25 = sshll.u32 %s1766_s0, 4  ;;  %p1029_p1 = pneg %p1569_p3  ;;  %s326_s25 = int_to_ptr.hbm [resolvable:$true] %s325_s25 }
  0x31   : > { %s1011_s24 = sshll.u32 %s1393_s13, 5  ;;  %s1768_s3 = sld [smem:[#allocation28_spill]] }
  0x32   : > { %p1030_p4 = pnand %p1029_p1, %p91_p8  ;;  %s370_s11 = scalar_lea.vmem [#allocation7], %s994_s21 }
  0x33   : > { %s378_s29 = sshll.u32 %s370_s11, 4  ;;  %s1769_s28 = smov 8   ;;  %s379_s29 = int_to_ptr.vmem [resolvable:$true] %s378_s29 }
  0x34   : > { %1032 = dma.hbm_to_vmem [thread:$0]  (!%p1030_p4), %s326_s25, 128, %s328_s27, [#allocation3]  }
  0x35   : > { %s1770_s30 = smov 128   ;;  %s414_s17 = scalar_lea.hbm %s1729_s5, %s1011_s24 }
  0x36   : > { %s409_s23 = scalar_lea.vmem [#allocation10], %s994_s21  ;;  %s439_s27 = scalar_lea.hbm %s1731_s7, %s1393_s13 }
  0x37   : > { %s375_s0 = scalar_lea.hbm %s1768_s3, %s1011_s24  ;;  %s417_s3 = sshll.u32 %s409_s23, 4  ;;  %s418_s3 = int_to_ptr.vmem [resolvable:$true] %s417_s3 }
  0x38   : > { %s376_s4 = sshll.u32 %s375_s0, 4  ;;  %s415_s0 = sshll.u32 %s414_s17, 4  ;;  %s377_s4 = int_to_ptr.hbm [resolvable:$true] %s376_s4  ;;  %s416_s0 = int_to_ptr.hbm [resolvable:$true] %s415_s0 }
  0x39   : > { %1039 = dma.hbm_to_vmem [thread:$0]  (!%p1517_p6), %s377_s4, 512, %s379_s29, %s1521_s16, %s1770_s30, %s1770_s30, %s1769_s28  }
  0x3a   : > { %1045 = dma.hbm_to_vmem [thread:$0]  (!%p1517_p6), %s416_s0, 512, %s418_s3, %s1534_s15, %s1770_s30, %s1770_s30, %s1769_s28  }
  0x3b   : > { %s441_s9 = sshll.u32 %s439_s27, 4  ;;  %s436_s4 = scalar_lea.vmem [#allocation11], %s1503_s20  ;;  %s442_s9 = int_to_ptr.hbm [resolvable:$true] %s441_s9 }
  0x3c   : > { %s443_s16 = sshll.u32 %s436_s4, 4  ;;  %s434_s14 = scalar_lea.sflag [#allocation12], %s1503_s20  ;;  %s444_s16 = int_to_ptr.vmem [resolvable:$true] %s443_s16 }
  0x3d   : > { %1048 = dma.hbm_to_vmem [thread:$0]  (!%p1517_p6), %s442_s9, 16, %s444_s16, %s434_s14  }
  0x3e   : > { %458 = sbr.rel (%p1569_p3) target bundleno = 1057 (0x421), region = 56 }
  0x43   : > { %1356 = dma.done.wait (%p91_p8), [#allocation3], 128  }
  0x44   : > { %1358 = vsyncadd (%p91_p8), [#allocation3], 4294967168  ;;  %s465_s3 = sand.u32 1, %s1540_s22   ;;  %s1613_s30 = sand.u32 1, %s1381_s10  }
  0x45   : > { %s1002_s15 = sshll.u32 %s1613_s30, 4  ;;  %s466_s20 = scalar_lea.sflag [#allocation6], %s465_s3 }
  0x46   : > { %s469_s18 = scalar_lea.vmem [#allocation5], %s1002_s15 }
  0x47   : > { %1360 = dma.done.wait (%p1549_p11), %s466_s20, 768  }
  0x48   : > { %1362 = vsyncadd (%p1549_p11), %s466_s20, 4294966528  ;;  %s1003_s9 = sshll.u32 %s1613_s30, 5  ;;  %s486_s24 = scalar_lea.sflag [#allocation9], %s465_s3 }
  0x49   : > { %s1621_s21 = scalar_lea.vmem [#allocation7], %s1003_s9  ;;  %s488_s1 = scalar_lea.vmem [#allocation8], %s1613_s30 }
  0x4a   : > { %1364 = dma.done.wait (%p1549_p11), %s486_s24, 528  }
  0x4b   : > { %1366 = vsyncadd (%p1549_p11), %s486_s24, 4294966768  ;;  %s1628_s22 = scalar_lea.vmem [#allocation10], %s1003_s9  ;;  %s505_s29 = scalar_lea.sflag [#allocation12], %s1613_s30 }
  0x4c   : > { %s507_s26 = scalar_lea.vmem [#allocation11], %s1613_s30 }
  0x4d   : > { %1368 = dma.done.wait (%p1549_p11), %s505_s29, 16  }
  0x4e   : > { %1370 = vsyncadd (%p1549_p11), %s505_s29, 4294967280  ;;  %p569_p5 = scmp.lt.s32.totalorder %s1389_s12, 3  ;;  %v580_v0 = vld [vmem:[%s469_s18 + $0x8] sm:$0xff]  ;;  %v579_v1 = vld [vmem:[%s469_s18] sm:$0xff]  ;;  %vm581_vm0 = vcmask 130048   ;;  %vm610_vm1 = vcmask 261120  }
  0x4f   : > { %v578_v2 = vld [vmem:[#allocation2] sm:$0xff]  ;;  %599 = vmatpush.msra.mxu0 %v580_v0  ;;  %v1402_v9 = vmov 32.0   ;;  %v645_v15 = vld [vmem:[%s1621_s21 + $0x10] sm:$0xff]  ;;  %v644_v17 = vld [vmem:[%s1621_s21 + $0x8] sm:$0xff]  ;;  %s1771_s18 = sld [smem:[#allocation30_spill]]  ;;  %s568_s24 = scalar_lea.vmem [#allocation13], %s1613_s30 }
  0x50   : > { %s1638_s28 = scalar_select %p569_p5, %s1389_s12, 3  ;;  %1115 = vrcp.f32 %v1402_v9  ;;  %v646_v14 = vld [vmem:[%s1621_s21 + $0x18] sm:$0xff]  ;;  %v643_v19 = vld [vmem:[%s1621_s21] sm:$0xff]  ;;  %v700_v45 = vld [vmem:[%s1628_s22 + $0x8] sm:$0xff]  ;;  %vm776_vm12 = vcmask 57344  }
  0x51   : > { %600 = vmatpush.msra.mxu0 %v579_v1  ;;  %666 = vmatpush.msra.mxu1 %v646_v14  ;;  %v1112_v37 = vld [vmem:[%s488_s1] ss:$0 sm:$0xff]  ;;  %v702_v43 = vld [vmem:[%s1628_s22 + $0x18] sm:$0xff]  ;;  %v699_v47 = vld [vmem:[%s1628_s22] sm:$0xff]  ;;  %s790_s1 = sshll.u32 %s568_s24, 4  ;;  %s779_s29 = scalar_lea.sflag [#allocation4], %s1613_s30  ;;  %s791_s1 = int_to_ptr.vmem [resolvable:$true] %s790_s1 }
  0x52   : > { %s571_s0 = scalar_lea.vmem %s1726_s2, %s1638_s28  ;;  %1005 = vmatmul.msk.f32.vlgmr.msra.gmra.mxu0 %vm581_vm0, %v578_v2  ;;  %s574_s25 = scalar_lea.vmem %s1730_s6, %s1638_s28  ;;  %v701_v44 = vld [vmem:[%s1628_s22 + $0x10] sm:$0xff]  ;;  %722 = vmatpush.msra.mxu2 %v702_v43 }
  0x53   : > { %v1111_v3 = vld [vmem:[%s571_s0] ss:$0 sm:$0xff]  ;;  %667 = vmatpush.msra.mxu1 %v645_v15  ;;  %s577_s3 = scalar_lea.vmem %s1732_s8, %s1638_s28 }
  0x54   : > { %723 = vmatpush.msra.mxu2 %v701_v44  ;;  %v1113_v0 = vld [vmem:[%s574_s25] ss:$0 sm:$0xff] }
  0x55   : > { %668 = vmatpush.msra.mxu1 %v644_v17  ;;  %s788_s9 = scalar_lea.hbm %s1771_s18, %s1389_s12  ;;  %s1323_s23 = scalar_lea.hbm %s1771_s18, 4 }
  0x56   : > { %v1116_v10 = vpop.eup %1115  ;;  %724 = vmatpush.msra.mxu2 %v700_v45  ;;  %s792_s22 = sshll.u32 %s788_s9, 4  ;;  %s793_s22 = int_to_ptr.hbm [resolvable:$true] %s792_s22 }
  0x57   : > { %v615_v11 = vmul.f32 32.0, %v1116_v10  ;;  %vm619_vm2 = vweird.f32 %v1116_v10  ;;  %669 = vmatpush.msra.mxu1 %v643_v19 }
  0x58   : > { %725 = vmatpush.msra.mxu2 %v699_v47 }
  0x59   : > { %v616_v12 = vsub.f32 1.0, %v615_v11 }
  0x5b   : > { %v617_v13 = vmul.f32 %v1116_v10, %v616_v12 }
  0x5d   : > { %v618_v16 = vadd.f32 %v1116_v10, %v617_v13 }
  0x5f   : > { %v1650_v20 = vsel %vm619_vm2, %v1116_v10, %v618_v16 }
  0xcf   : > { %v602_v4 = vpop.f32.mrf.mxu0 }
  0xd0   : > { %v609_v5 = vadd.f32 %v1111_v3, %v602_v4 }
  0xd2   : > { %v611_v6 = vsel %vm610_vm1, %v609_v5, 0.0  ;;  %v622_v7 = vmul.f32 %v609_v5, %v609_v5 }
  0xd3   : > { %612 = vadd.xlane.f32.xlu0 %v611_v6  ;;  %v763_v6 = vld [vmem:[%s577_s3] sm:$0x1] }
  0xd4   : > { %v623_v8 = vsel %vm610_vm1, %v622_v7, 0.0  ;;  %v1403_v7 = vmov 0  }
  0xd5   : > { %1110 = vset.pattern.permute.xlu0 %v1403_v7 }
  0xdb   : > { %624 = vadd.xlane.f32.xlu0 %v623_v8 }
  0xef   : > { %766 = vperm.xlu0 %1110, %v763_v6  }
 0x146   : > { %v613_v18 = vpop.xlane.xlu0 %612 }
 0x147   : > { %v621_v21 = vmul.f32 %v1650_v20, %v613_v18 }
 0x149   : > { %v627_v23 = vmul.f32 %v621_v21, %v621_v21  ;;  %v629_v33 = vsub.f32 %v609_v5, %v621_v21 }
 0x14e   : > { %v625_v22 = vpop.xlane.xlu0 %624 }
 0x14f   : > { %v626_v24 = vmul.f32 %v625_v22, %v1650_v20 }
 0x151   : > { %v628_v25 = vsub.f32 %v626_v24, %v627_v23 }
 0x153   : > { %v630_v26 = vadd.f32 1e-05, %v628_v25 }
 0x155   : > { %1117 = vrsqrt.f32 %v630_v26  ;;  %vm637_vm4 = vweird.f32 %v630_v26 }
 0x15b   : > { %v1118_v27 = vpop.eup %1117 }
 0x15c   : > { %v632_v28 = vmul.f32 %v1118_v27, %v630_v26  ;;  %vm638_vm3 = vweird.f32 %v1118_v27 }
 0x15d   : > { %vm639_vm5 = vmor %vm637_vm4, %vm638_vm3 }
 0x15e   : > { %v633_v29 = vmul.f32 %v1118_v27, %v632_v28 }
 0x160   : > { %v634_v30 = vmul.f32 0.5, %v633_v29  ;;  %v772_v29 = vlaneseq }
 0x161   : > { %v767_v28 = vpop.permute.xlu0 %766 }
 0x162   : > { %v635_v31 = vsub.f32 1.5, %v634_v30  ;;  %v769_v30 = vperm.slane %v767_v28, 0 }
 0x164   : > { %v636_v32 = vmul.f32 %v1118_v27, %v635_v31  ;;  %v773_v31 = vand.u32 127, %v772_v29 }
 0x166   : > { %v640_v34 = vsel %vm639_vm5, %v1118_v27, %v636_v32 }
 0x167   : > { %v641_v35 = vmul.f32 %v640_v34, %v629_v33 }
 0x169   : > { %v642_v36 = vmax.f32 %v641_v35, 0.0 }
 0x16b   : > { %1006 = vmatmul.msk.f32.vlgmr.msra.gmra.mxu1 %vm610_vm1, %v642_v36 }
 0x1e8   : > { %v671_v38 = vpop.f32.mrf.mxu1 }
 0x1e9   : > { %v672_v39 = vadd.f32 %v1112_v37, %v671_v38 }
 0x1eb   : > { %v674_v40 = vsel %vm610_vm1, %v672_v39, 0.0  ;;  %v678_v41 = vmul.f32 %v672_v39, %v672_v39 }
 0x1ec   : > { %675 = vadd.xlane.f32.xlu1 %v674_v40 }
 0x1ed   : > { %v679_v42 = vsel %vm610_vm1, %v678_v41, 0.0 }
 0x1f4   : > { %680 = vadd.xlane.f32.xlu1 %v679_v42 }
 0x25f   : > { %v676_v46 = vpop.xlane.xlu1 %675 }
 0x260   : > { %v677_v48 = vmul.f32 %v676_v46, %v1650_v20 }
 0x262   : > { %v683_v50 = vmul.f32 %v677_v48, %v677_v48  ;;  %v685_v60 = vsub.f32 %v672_v39, %v677_v48 }
 0x267   : > { %v681_v49 = vpop.xlane.xlu1 %680 }
 0x268   : > { %v682_v51 = vmul.f32 %v681_v49, %v1650_v20 }
 0x26a   : > { %v684_v52 = vsub.f32 %v682_v51, %v683_v50 }
 0x26c   : > { %v686_v53 = vadd.f32 1e-05, %v684_v52 }
 0x26e   : > { %1119 = vrsqrt.f32 %v686_v53  ;;  %vm693_vm7 = vweird.f32 %v686_v53 }
 0x274   : > { %v1120_v54 = vpop.eup %1119 }
 0x275   : > { %v688_v55 = vmul.f32 %v1120_v54, %v686_v53  ;;  %vm694_vm6 = vweird.f32 %v1120_v54 }
 0x276   : > { %vm695_vm8 = vmor %vm693_vm7, %vm694_vm6 }
 0x277   : > { %v689_v56 = vmul.f32 %v1120_v54, %v688_v55 }
 0x279   : > { %v690_v57 = vmul.f32 0.5, %v689_v56 }
 0x27b   : > { %v691_v58 = vsub.f32 1.5, %v690_v57 }
 0x27d   : > { %v692_v59 = vmul.f32 %v1120_v54, %v691_v58 }
 0x27f   : > { %v696_v61 = vsel %vm695_vm8, %v1120_v54, %v692_v59 }
 0x280   : > { %v697_v62 = vmul.f32 %v696_v61, %v685_v60 }
 0x282   : > { %v698_v63 = vmax.f32 %v697_v62, 0.0 }
 0x284   : > { %1007 = vmatmul.msk.f32.vlgmr.msra.gmra.mxu2 %vm610_vm1, %v698_v63 }
 0x307   : > { %v727_v1 = vpop.f32.mrf.mxu2 }
 0x308   : > { %v728_v2 = vadd.f32 %v1113_v0, %v727_v1 }
 0x30a   : > { %v730_v3 = vsel %vm610_vm1, %v728_v2, 0.0  ;;  %v734_v4 = vmul.f32 %v728_v2, %v728_v2 }
 0x30b   : > { %731 = vadd.xlane.f32.xlu2 %v730_v3 }
 0x30c   : > { %v735_v5 = vsel %vm610_vm1, %v734_v4, 0.0 }
 0x313   : > { %736 = vadd.xlane.f32.xlu2 %v735_v5 }
 0x37e   : > { %v732_v8 = vpop.xlane.xlu2 %731 }
 0x37f   : > { %v733_v9 = vmul.f32 %v732_v8, %v1650_v20 }
 0x381   : > { %v739_v11 = vmul.f32 %v733_v9, %v733_v9  ;;  %v741_v22 = vsub.f32 %v728_v2, %v733_v9 }
 0x386   : > { %v737_v10 = vpop.xlane.xlu2 %736 }
 0x387   : > { %v738_v12 = vmul.f32 %v737_v10, %v1650_v20  ;;  %v1114_v20 = vld [vmem:[%s507_s26] ss:$0 sm:$0xff]  ;;  %s1317_s26 = sshra.s32 %s793_s22, 4  ;;  %s1318_s26 = int_to_ptr.hbm [resolvable:$true] %s1317_s26 }
 0x388   : > { %s1319_s28 = scalar_lea.hbm %s1318_s26, 1  ;;  %p1324_p9 = scmp.lt.s32.totalorder %s1318_s26, %s1771_s18 }
 0x389   : > { %v740_v13 = vsub.f32 %v738_v12, %v739_v11  ;;  %p1320_p6 = scmp.ne.s32.totalorder %s1318_s26, %s1319_s28  ;;  %p1325_p10 = scmp.lt.s32.totalorder %s1323_s23, %s1319_s28 }
 0x38b   : > { %v742_v14 = vadd.f32 1e-05, %v740_v13  ;;  %p1321_p7 = pnand %p1320_p6, %p1557_p13  ;;  %p1326_p11 = por %p1325_p10, %p1324_p9 }
 0x38d   : > { %1121 = vrsqrt.f32 %v742_v14  ;;  %vm749_vm10 = vweird.f32 %v742_v14  ;;  %p1322_p8 = pneg %p1321_p7 }
 0x38f   : > { %p1327_p12 = pnand %p1326_p11, %p1322_p8 }
 0x393   : > { %v1122_v15 = vpop.eup %1121 }
 0x394   : > { %v744_v16 = vmul.f32 %v1122_v15, %v742_v14  ;;  %vm750_vm9 = vweird.f32 %v1122_v15 }
 0x395   : > { %vm751_vm11 = vmor %vm749_vm10, %vm750_vm9 }
 0x396   : > { %v745_v17 = vmul.f32 %v1122_v15, %v744_v16 }
 0x398   : > { %v746_v18 = vmul.f32 0.5, %v745_v17 }
 0x39a   : > { %v747_v19 = vsub.f32 1.5, %v746_v18 }
 0x39c   : > { %v748_v21 = vmul.f32 %v1122_v15, %v747_v19 }
 0x39e   : > { %v752_v23 = vsel %vm751_vm11, %v1122_v15, %v748_v21 }
 0x39f   : > { %v753_v24 = vmul.f32 %v752_v23, %v741_v22 }
 0x3a1   : > { %v754_v25 = vmax.f32 %v753_v24, 0.0 }
 0x3a3   : > { %v759_v26 = vmul.f32 %v1114_v20, %v754_v25 }
 0x3a5   : > { %v760_v27 = vsel %vm610_vm1, %v759_v26, 0.0 }
 0x3a6   : > { %761 = vadd.xlane.f32.xlu1 %v760_v27 }
 0x419   : > { %v762_v32 = vpop.xlane.xlu1 %761 }
 0x41a   : > { %v770_v33 = vadd.f32 %v769_v30, %v762_v32 }
 0x41c   : > { %v774_v34 = vperm.slane %v770_v33, %v773_v31 }
 0x41e   : > { %777 = vst.msk [vmem:[%s568_s24] sm:$0x1] %vm776_vm12, %v774_v34 }
 0x41f   : > { %1330 = shalt.err (!%p1327_p12)
}
 0x420   : > { %1027 = dma.vmem_to_hbm [thread:$0]  (%p1557_p13), %s791_s1, 16, %s793_s22, %s779_s29  }
 0x421 PF: > { %s1773_s30 = sld [smem:[#allocation21_spill]] }
 0x422   : > { %s1774_s11 = sld [smem:[#allocation19_spill]] }
 0x427   : > { %p1056_p2 = scmp.ge.s32.totalorder %s1773_s30, 2 }
 0x428   : > { %s804_s27 = sand.u32 1, %s1774_s11  }
 0x429   : > { %p1050_p3 = pnand %p1056_p2, %p1561_p0  ;;  %s805_s4 = scalar_lea.sflag [#allocation4], %s804_s27 }
 0x42b   : > { %p1051_p1 = pneg %p1050_p3 }
 0x42d   : > { %1372 = dma.done.wait (%p1051_p1), %s805_s4, 16  }
 0x42e   : > { %1374 = vsyncadd (%p1051_p1), %s805_s4, 4294967280  ;;  %s32_s14 = sadd.s32 1, %s1773_s30   ;;  %s1776_s16 = sld [smem:[#allocation20_spill]] }
 0x42f   : > { %p29_p4 = scmp.ge.s32.totalorder %s32_s14, 6   ;;  %s1777_s11 = sld [smem:[#allocation23_spill]] }
 0x430   : > { %s1778_s3 = sld [smem:[#allocation22_spill]]  ;;  %s1779_s30 = smov %s1381_s10 }
 0x431   : > { %s1781_s12 = smov %s1393_s13 }
 0x432   :  { %31 = sbr.rel (!%p29_p4) target bundleno = 17 (0x11), region = 164 }
 0x434   : > { %s1780_s10 = smov %s1776_s16 }
 0x436   : > { %s1782_s13 = smov %s1778_s3 }
 0x437   :  { %810 = vsyncpa [#allocation3], 1 }
 0x438   :  { %812 = vsyncpa [#allocation3 + $0x1], 1 }
 0x439   :  { %813 = vsyncpa [#allocation6], 1 }
 0x43a   :  { %815 = vsyncpa [#allocation6 + $0x1], 1 }
 0x43b   :  { %816 = vsyncpa [#allocation9], 1 }
 0x43c   :  { %818 = vsyncpa [#allocation9 + $0x1], 1 }
 0x43d   :  { %819 = vsyncpa [#allocation12], 1 }
 0x43e   :  { %821 = vsyncpa [#allocation12 + $0x1], 1 }
 0x43f   :  { %822 = vsyncpa [#allocation4], 1 }
 0x440   :  { %824 = vsyncpa [#allocation4 + $0x1], 1 }

</bundles_post_ra>
